<compile_context>
chip_gen: v7x
topology: tpu7x:2x2x1
jax: 0.10.0
libtpu: 0.0.40
codegen_flags: <defaults>
</compile_context>

<pallas_src>
import functools

import jax
import jax.numpy as jnp
from jax import lax
from jax.experimental import pallas as pl
from jax.experimental.pallas import tpu as pltpu

LANE = 128
SUBLANE = 8
MAX_BATCH_TILE = 256   # capped at 256 (not 512) so v7x's 64 MiB VMEM keeps headroom
MAX_N_TILE = 512
MAX_K_TILE = 512


def _round_up(x, m):
    return (x + m - 1) // m * m


def _pick_tile(total, max_tile, quantum):
    """Largest multiple of `quantum` <= max_tile that divides `total`.

    `total` is already a multiple of `quantum`, so `quantum` always works and we
    never pad beyond the quantum (avoids the ~2x batch-padding blowup).
    """
    best = quantum
    t = quantum
    while t <= max_tile:
        if total % t == 0:
            best = t
        t += quantum
    return best


def _linear_adapt_kernel(*refs, has_adapt_w, has_bias):
    """One (bt, tn) output tile, accumulated over the K grid axis.

    refs (in order):
      x (bt, tk), w (tn, tk) [PyTorch layout], [aw (tn, tk)], [b (1, tn) f32],
      out (bt, tn), acc scratch (bt, tn) f32
    Static flags select which refs exist (baked via functools.partial).
    """
    it = iter(refs)
    x_ref = next(it)
    w_ref = next(it)
    aw_ref = next(it) if has_adapt_w else None
    b_ref = next(it) if has_bias else None
    o_ref = next(it)
    acc_ref = next(it)

    k = pl.program_id(2)

    @pl.when(k == 0)
    def _init():
        acc_ref[...] = jnp.zeros_like(acc_ref)

    w = w_ref[...]
    if has_adapt_w:
        # tiny (tn, tk) VPU multiply per step; stays in the operand dtype so the
        # MXU sees bf16 operands when the caller passes bf16.
        w = w * aw_ref[...]

    # x (bt, tk) . w (tn, tk) contracted on the K (last) dims -> (bt, tn), f32 acc.
    acc_ref[...] += lax.dot_general(
        x_ref[...], w,
        dimension_numbers=(((1,), (1,)), ((), ())),
        preferred_element_type=jnp.float32)

    @pl.when(k == pl.num_programs(2) - 1)
    def _finalize():
        acc = acc_ref[...]
        if has_bias:
            acc = acc + b_ref[...]          # (1, tn) f32 broadcasts over rows
        o_ref[...] = acc.astype(o_ref.dtype)


@jax.jit
def linear_with_param_adapt(x, weight, bias=None,
                            adapt_vector_for_weight=None,
                            adapt_vector_for_bias=None):
    """x: [B, dim_in]; weight: [dim_out, dim_in] (PyTorch layout); bias: [dim_out]."""
    dim_out, dim_in = weight.shape
    B = x.shape[0]

    # Preserve the caller's dtype (bf16 stays bf16 -> native MXU path, half the
    # HBM/VMEM bytes); accumulation below is always f32.
    dtype = jnp.result_type(x.dtype, weight.dtype)
    x = x.astype(dtype)
    weight = weight.astype(dtype)

    has_bias = bias is not None
    has_aw = adapt_vector_for_weight is not None
    has_ab = has_bias and (adapt_vector_for_bias is not None)

    # ---- aligned padded sizes (lane=128 on N/K, sublane=8 on batch) ----
    k_pad = _round_up(dim_in, LANE)
    n_pad = _round_up(dim_out, LANE)
    b_pad = _round_up(B, SUBLANE)

    # Tile sizes: largest aligned divisors under the caps; per-step VMEM working set
    # (double-buffered tiles + f32 acc) stays well under every generation's scoped
    # default, so no vmem_limit_bytes bump is needed.
    bt = _pick_tile(b_pad, MAX_BATCH_TILE, SUBLANE)
    tn = _pick_tile(n_pad, MAX_N_TILE, LANE)
    tk = _pick_tile(k_pad, MAX_K_TILE, LANE)

    def pad2(a, rows, cols):
        return jnp.pad(a, ((0, rows - a.shape[0]), (0, cols - a.shape[1])))

    x_p = pad2(x, b_pad, k_pad)
    w_p = pad2(weight, n_pad, k_pad)               # PyTorch [N, K] layout, no transpose

    args = [x_p, w_p]
    in_specs = [
        pl.BlockSpec((bt, tk), lambda i, j, k: (i, k)),   # x: batch x reduction tiles
        pl.BlockSpec((tn, tk), lambda i, j, k: (j, k)),   # weight: out x reduction tiles
    ]

    if has_aw:
        aw = adapt_vector_for_weight.reshape(dim_out, dim_in).astype(dtype)
        args.append(pad2(aw, n_pad, k_pad))
        in_specs.append(pl.BlockSpec((tn, tk), lambda i, j, k: (j, k)))

    if has_bias:
        b_eff = bias.reshape(dim_out).astype(jnp.float32)
        if has_ab:
            b_eff = b_eff * adapt_vector_for_bias.reshape(dim_out).astype(jnp.float32)
        args.append(pad2(b_eff.reshape(1, dim_out), 1, n_pad))
        in_specs.append(pl.BlockSpec((1, tn), lambda i, j, k: (0, j)))

    grid = (b_pad // bt, n_pad // tn, k_pad // tk)
    n_i, n_j = grid[0], grid[1]

    # Advisory cost estimate for the XLA scheduler (matches the tiled traffic).
    itemsize = jnp.dtype(dtype).itemsize
    flops = 2 * b_pad * k_pad * n_pad + (n_i * k_pad * n_pad if has_aw else 0)
    bytes_accessed = (itemsize * (n_j * b_pad * k_pad
                                  + n_i * (2 if has_aw else 1) * n_pad * k_pad
                                  + b_pad * n_pad)
                      + (4 * n_pad if has_bias else 0))
    cost = pl.CostEstimate(flops=int(flops), transcendentals=0,
                           bytes_accessed=int(bytes_accessed))

    kernel = functools.partial(_linear_adapt_kernel,
                               has_adapt_w=has_aw, has_bias=has_bias)

    out = pl.pallas_call(
        kernel,
        out_shape=jax.ShapeDtypeStruct((b_pad, n_pad), dtype),
        grid=grid,
        in_specs=in_specs,
        out_specs=pl.BlockSpec((bt, tn), lambda i, j, k: (i, j)),
        scratch_shapes=[pltpu.VMEM((bt, tn), jnp.float32)],
        compiler_params=pltpu.CompilerParams(
            dimension_semantics=("parallel", "parallel", "arbitrary")),
        cost_estimate=cost,
    )(*args)

    return out[:B, :dim_out]


def reference_forward(x, weight, bias=None, adapt_w=None, adapt_b=None):
    """Pure-JAX mirror of the PyTorch forward."""
    w = weight
    if adapt_w is not None:
        w = w * adapt_w.reshape(weight.shape)
    y = x @ w.T
    if bias is not None:
        b = bias
        if adapt_b is not None:
            b = b * adapt_b.reshape(bias.shape)
        y = y + b
    return y


if __name__ == "__main__":
    key = jax.random.PRNGKey(0)
    kx, kw, kb, kaw, kab = jax.random.split(key, 5)

    # Small, deliberately non-(8,128)-aligned shapes (MNIST-MLP-like layer).
    B, dim_in, dim_out = 4, 48, 20

    x = jax.random.normal(kx, (B, dim_in), dtype=jnp.float32)
    wb = 1.0 / (dim_in ** 0.5)     # kaiming_uniform_(a=sqrt(5)) -> U(-1/sqrt(fan_in), ...)
    weight = jax.random.uniform(kw, (dim_out, dim_in), jnp.float32, -wb, wb)
    bb = 1.0 / (dim_out ** 0.5)
    bias = jax.random.uniform(kb, (dim_out,), jnp.float32, -bb, bb)
    adapt_w = jax.random.uniform(kaw, (dim_out * dim_in,), jnp.float32, 0.5, 1.5)
    adapt_b = jax.random.uniform(kab, (dim_out,), jnp.float32, 0.5, 1.5)

    # Path 1: both adaptation vectors supplied.
    out1 = jax.block_until_ready(linear_with_param_adapt(x, weight, bias, adapt_w, adapt_b))
    ref1 = reference_forward(x, weight, bias, adapt_w, adapt_b)
    assert out1.shape == (B, dim_out), out1.shape
    assert jnp.allclose(out1, ref1, atol=1e-4, rtol=1e-4), float(jnp.max(jnp.abs(out1 - ref1)))

    # Path 2: plain linear (no adaptation), with bias.
    out2 = jax.block_until_ready(linear_with_param_adapt(x, weight, bias))
    ref2 = reference_forward(x, weight, bias)
    assert jnp.allclose(out2, ref2, atol=1e-4, rtol=1e-4), float(jnp.max(jnp.abs(out2 - ref2)))

    # Path 3: no bias, weight adaptation only.
    out3 = jax.block_until_ready(linear_with_param_adapt(x, weight, None, adapt_w, None))
    ref3 = reference_forward(x, weight, None, adapt_w, None)
    assert jnp.allclose(out3, ref3, atol=1e-4, rtol=1e-4), float(jnp.max(jnp.abs(out3 - ref3)))

    # Path 4: moderate non-aligned shapes exercising multi-tile batch + K-reduction
    # accumulator path (b_pad=520 -> bt=104 x 5 tiles; k_pad=640 -> tk=128 x 5 tiles).
    k2 = jax.random.PRNGKey(1)
    k2x, k2w, k2b, k2aw, k2ab = jax.random.split(k2, 5)
    B2, din2, dout2 = 520, 600, 200
    x2 = jax.random.normal(k2x, (B2, din2), dtype=jnp.float32)
    w2 = jax.random.uniform(k2w, (dout2, din2), jnp.float32, -1.0 / din2 ** 0.5, 1.0 / din2 ** 0.5)
    b2 = jax.random.uniform(k2b, (dout2,), jnp.float32, -0.05, 0.05)
    aw2 = jax.random.uniform(k2aw, (dout2 * din2,), jnp.float32, 0.5, 1.5)
    ab2 = jax.random.uniform(k2ab, (dout2,), jnp.float32, 0.5, 1.5)
    out4 = jax.block_until_ready(linear_with_param_adapt(x2, w2, b2, aw2, ab2))
    ref4 = reference_forward(x2, w2, b2, aw2, ab2)
    assert out4.shape == (B2, dout2), out4.shape
    assert jnp.allclose(out4, ref4, atol=1e-3, rtol=1e-3), float(jnp.max(jnp.abs(out4 - ref4)))

    print("KERNEL_OK")
</pallas_src>

<mosaic_0001>
module attributes {stable_mosaic.version = 11 : i64} {
  func.func @_linear_adapt_kernel(%arg0: i32, %arg1: i32, %arg2: i32, %arg3: memref<8x128xf32, #tpu.memory_space<vmem>>, %arg4: memref<128x128xf32, #tpu.memory_space<vmem>>, %arg5: memref<128x128xf32, #tpu.memory_space<vmem>>, %arg6: memref<1x128xf32, #tpu.memory_space<vmem>>, %arg7: memref<8x128xf32, #tpu.memory_space<vmem>>, %arg8: memref<8x128xf32, #tpu.memory_space<vmem>>) attributes {dimension_semantics = [#tpu.dimension_semantics<parallel>, #tpu.dimension_semantics<parallel>, #tpu.dimension_semantics<arbitrary>], iteration_bounds = array<i64: 1, 1, 1>, scalar_prefetch = 0 : i64, scratch_operands = 1 : i64, tpu.core_type = #tpu.core_type<tc>, window_params = [{transform_indices = @transform_0, window_bounds = array<i64: 8, 128>}, {transform_indices = @transform_1, window_bounds = array<i64: 128, 128>}, {transform_indices = @transform_2, window_bounds = array<i64: 128, 128>}, {transform_indices = @transform_3, window_bounds = array<i64: 1, 128>}, {transform_indices = @transform_4, window_bounds = array<i64: 8, 128>}]} {
    %c0_i32 = arith.constant 0 : i32
    %0 = arith.cmpi eq, %arg2, %c0_i32 : i32
    %1 = arith.extui %0 : i1 to i32
    %c0_i32_0 = arith.constant 0 : i32
    %2 = arith.cmpi ne, %1, %c0_i32_0 : i32
    scf.if %2 {
      %cst_12 = arith.constant 0.000000e+00 : f32
      %14 = vector.broadcast %cst_12 : f32 to vector<8x128xf32>
      %c0_13 = arith.constant 0 : index
      %c0_14 = arith.constant 0 : index
      %15 = vector.load %arg8[%c0_13, %c0_14] : memref<8x128xf32, #tpu.memory_space<vmem>>, vector<8x128xf32>
      tpu.vector_store %arg8[%c0_13, %c0_14], %14 {strides = array<i32>} : memref<8x128xf32, #tpu.memory_space<vmem>>, vector<8x128xf32>,
    } else {
    }
    %c0 = arith.constant 0 : index
    %c0_1 = arith.constant 0 : index
    %3 = vector.load %arg4[%c0, %c0_1] : memref<128x128xf32, #tpu.memory_space<vmem>>, vector<128x128xf32>
    %c0_2 = arith.constant 0 : index
    %c0_3 = arith.constant 0 : index
    %4 = vector.load %arg5[%c0_2, %c0_3] : memref<128x128xf32, #tpu.memory_space<vmem>>, vector<128x128xf32>
    %5 = arith.mulf %3, %4 : vector<128x128xf32>
    %c0_4 = arith.constant 0 : index
    %c0_5 = arith.constant 0 : index
    %6 = vector.load %arg8[%c0_4, %c0_5] : memref<8x128xf32, #tpu.memory_space<vmem>>, vector<8x128xf32>
    %c0_6 = arith.constant 0 : index
    %c0_7 = arith.constant 0 : index
    %7 = vector.load %arg3[%c0_6, %c0_7] : memref<8x128xf32, #tpu.memory_space<vmem>>, vector<8x128xf32>
    %cst = arith.constant dense<0.000000e+00> : vector<8x128xf32>
    %8 = tpu.matmul %7, %5, %cst {dimension_numbers = #tpu.dot_dimension_numbers<[1], [1], [0], [0], [0, 0, 1, 0], [], []>} : vector<8x128xf32>, vector<128x128xf32>, vector<8x128xf32> -> vector<8x128xf32>
    %9 = arith.addf %6, %8 : vector<8x128xf32>
    %c0_8 = arith.constant 0 : index
    %c0_9 = arith.constant 0 : index
    %10 = vector.load %arg8[%c0_8, %c0_9] : memref<8x128xf32, #tpu.memory_space<vmem>>, vector<8x128xf32>
    tpu.vector_store %arg8[%c0_8, %c0_9], %9 {strides = array<i32>} : memref<8x128xf32, #tpu.memory_space<vmem>>, vector<8x128xf32>,
    %c0_i32_10 = arith.constant 0 : i32
    %11 = arith.cmpi eq, %arg2, %c0_i32_10 : i32
    %12 = arith.extui %11 : i1 to i32
    %c0_i32_11 = arith.constant 0 : i32
    %13 = arith.cmpi ne, %12, %c0_i32_11 : i32
    scf.if %13 {
      %c0_12 = arith.constant 0 : index
      %c0_13 = arith.constant 0 : index
      %14 = vector.load %arg8[%c0_12, %c0_13] : memref<8x128xf32, #tpu.memory_space<vmem>>, vector<8x128xf32>
      %c0_14 = arith.constant 0 : index
      %c0_15 = arith.constant 0 : index
      %15 = vector.load %arg6[%c0_14, %c0_15] : memref<1x128xf32, #tpu.memory_space<vmem>>, vector<1x128xf32>
      %16 = vector.broadcast %15 : vector<1x128xf32> to vector<8x128xf32>
      %17 = arith.addf %14, %16 : vector<8x128xf32>
      %c0_16 = arith.constant 0 : index
      %c0_17 = arith.constant 0 : index
      %18 = vector.load %arg7[%c0_16, %c0_17] : memref<8x128xf32, #tpu.memory_space<vmem>>, vector<8x128xf32>
      tpu.vector_store %arg7[%c0_16, %c0_17], %17 {strides = array<i32>} : memref<8x128xf32, #tpu.memory_space<vmem>>, vector<8x128xf32>,
    } else {
    }
    return
  }
  func.func @transform_0(%arg0: i32, %arg1: i32, %arg2: i32) -> (i32, i32) {
    %c0_i32 = arith.constant 0 : i32
    return %arg0, %arg2 : i32, i32
  }
  func.func @transform_1(%arg0: i32, %arg1: i32, %arg2: i32) -> (i32, i32) {
    %c0_i32 = arith.constant 0 : i32
    return %arg1, %arg2 : i32, i32
  }
  func.func @transform_2(%arg0: i32, %arg1: i32, %arg2: i32) -> (i32, i32) {
    %c0_i32 = arith.constant 0 : i32
    return %arg1, %arg2 : i32, i32
  }
  func.func @transform_3(%arg0: i32, %arg1: i32, %arg2: i32) -> (i32, i32) {
    %c0_i32 = arith.constant 0 : i32
    %c0_i32_0 = arith.constant 0 : i32
    return %c0_i32, %arg1 : i32, i32
  }
  func.func @transform_4(%arg0: i32, %arg1: i32, %arg2: i32) -> (i32, i32) {
    %c0_i32 = arith.constant 0 : i32
    return %arg0, %arg1 : i32, i32
  }
}

</mosaic_0001>

<bundles_post_ra>
// kernel: linear_with_param_adapt.1
= control target key start
LH: loop header
LB: loop body
LE: loop exit
PB: predicated region body
PF: predicated region fallthrough
CT: control target
= control target key end

     0   :  { %v241_v0 = vmov 0.0|0.0   ;;  %vm242_vm0 = vmmov 0   ;;  %v243_v4 = vmov 0.0   ;;  %s382_s1 = inlined_call_operand.vmem [shape: f32[128,128], index: 1, kind: input, shape index: {}]   ;;  %s383_s2 = inlined_call_operand.vmem [shape: f32[128,128], index: 2, kind: input, shape index: {}]   ;;  %s384_s0 = inlined_call_operand.vmem [shape: f32[8,128], index: 0, kind: input, shape index: {}]   ;;  %s385_s3 = inlined_call_operand.vmem [shape: f32[1,128], index: 3, kind: input, shape index: {}]   ;;  %s386_s4 = inlined_call_operand.vmem [shape: f32[8,128], index: 4, kind: output, shape index: {}]  }
   0x1   :  { %214 = vmatprep.subr.bf16.mxu0 %v241_v0  ;;  %v22_v1 = vld [vmem:[%s382_s1] sm:$0xff]  ;;  %v23_v2 = vld [vmem:[%s382_s1 + $0x8] sm:$0xff]  ;;  %211 = vmatprep.mubr.msk.f32.mxu0 %vm242_vm0, %v243_v4  ;;  %v24_v8 = vld [vmem:[%s382_s1 + $0x10] sm:$0xff] }
   0x2   :  { %v38_v3 = vld [vmem:[%s383_s2] sm:$0xff]  ;;  %v39_v5 = vld [vmem:[%s383_s2 + $0x8] sm:$0xff]  ;;  %v25_v9 = vld [vmem:[%s382_s1 + $0x18] sm:$0xff] }
   0x3   :  { %v54_v6 = vmul.f32 %v38_v3, %v22_v1  ;;  %v55_v7 = vmul.f32 %v39_v5, %v23_v2  ;;  %v40_v10 = vld [vmem:[%s383_s2 + $0x10] sm:$0xff]  ;;  %v41_v11 = vld [vmem:[%s383_s2 + $0x18] sm:$0xff]  ;;  %v26_v16 = vld [vmem:[%s382_s1 + $0x20] sm:$0xff] }
   0x4   :  { %v56_v13 = vmul.f32 %v40_v10, %v24_v8  ;;  %v57_v14 = vmul.f32 %v41_v11, %v25_v9  ;;  %v27_v17 = vld [vmem:[%s382_s1 + $0x28] sm:$0xff]  ;;  %v42_v18 = vld [vmem:[%s383_s2 + $0x20] sm:$0xff]  ;;  %v28_v23 = vld [vmem:[%s382_s1 + $0x30] sm:$0xff] }
   0x5   :  { %v215_v12 = vpack.c.bf16 %v55_v7, %v54_v6  ;;  %v43_v19 = vld [vmem:[%s383_s2 + $0x28] sm:$0xff]  ;;  %v58_v20 = vmul.f32 %v42_v18, %v26_v16  ;;  %v29_v24 = vld [vmem:[%s382_s1 + $0x38] sm:$0xff]  ;;  %v44_v25 = vld [vmem:[%s383_s2 + $0x30] sm:$0xff] }
   0x6   :  { %v218_v15 = vpack.c.bf16 %v57_v14, %v56_v13  ;;  %v59_v21 = vmul.f32 %v43_v19, %v27_v17  ;;  %v45_v26 = vld [vmem:[%s383_s2 + $0x38] sm:$0xff]  ;;  %v60_v27 = vmul.f32 %v44_v25, %v28_v23  ;;  %v30_v30 = vld [vmem:[%s382_s1 + $0x40] sm:$0xff]  ;;  %v31_v31 = vld [vmem:[%s382_s1 + $0x48] sm:$0xff] }
   0x7   :  { %216 = vmatpush3.bf16.xpose.msra.mxu0 %v215_v12  ;;  %v61_v28 = vmul.f32 %v45_v26, %v29_v24  ;;  %v46_v32 = vld [vmem:[%s383_s2 + $0x40] sm:$0xff]  ;;  %v47_v33 = vld [vmem:[%s383_s2 + $0x48] sm:$0xff]  ;;  %v32_v37 = vld [vmem:[%s382_s1 + $0x50] sm:$0xff] }
   0x8   :  { %217 = vmatprep.subr.bf16.mxu0 %v241_v0  ;;  %v221_v22 = vpack.c.bf16 %v59_v21, %v58_v20  ;;  %v62_v34 = vmul.f32 %v46_v32, %v30_v30  ;;  %v63_v35 = vmul.f32 %v47_v33, %v31_v31  ;;  %v33_v38 = vld [vmem:[%s382_s1 + $0x58] sm:$0xff]  ;;  %v48_v39 = vld [vmem:[%s383_s2 + $0x50] sm:$0xff]  ;;  %v34_v44 = vld [vmem:[%s382_s1 + $0x60] sm:$0xff] }
   0x9   :  { %v224_v29 = vpack.c.bf16 %v61_v28, %v60_v27  ;;  %v49_v40 = vld [vmem:[%s383_s2 + $0x58] sm:$0xff]  ;;  %v64_v41 = vmul.f32 %v48_v39, %v32_v37  ;;  %v35_v45 = vld [vmem:[%s382_s1 + $0x68] sm:$0xff]  ;;  %v50_v46 = vld [vmem:[%s383_s2 + $0x60] sm:$0xff] }
   0xa   :  { %v227_v36 = vpack.c.bf16 %v63_v35, %v62_v34  ;;  %v65_v42 = vmul.f32 %v49_v40, %v33_v38  ;;  %v51_v47 = vld [vmem:[%s383_s2 + $0x68] sm:$0xff]  ;;  %v66_v48 = vmul.f32 %v50_v46, %v34_v44  ;;  %v36_v51 = vld [vmem:[%s382_s1 + $0x70] sm:$0xff]  ;;  %v37_v52 = vld [vmem:[%s382_s1 + $0x78] sm:$0xff] }
   0xb   :  { %v67_v49 = vmul.f32 %v51_v47, %v35_v45  ;;  %v52_v53 = vld [vmem:[%s383_s2 + $0x70] sm:$0xff]  ;;  %v53_v54 = vld [vmem:[%s383_s2 + $0x78] sm:$0xff]  ;;  %v71_v58 = vld [vmem:[%s384_s0] sm:$0xff] }
   0xc   :  { %v230_v43 = vpack.c.bf16 %v65_v42, %v64_v41  ;;  %v68_v55 = vmul.f32 %v52_v53, %v36_v51  ;;  %v69_v56 = vmul.f32 %v53_v54, %v37_v52  ;;  %v161_v59 = vld [vmem:[%s385_s3] ss:$0 sm:$0xff] }
   0xd   :  { %v233_v50 = vpack.c.bf16 %v67_v49, %v66_v48 }
   0xe   :  { %v236_v57 = vpack.c.bf16 %v69_v56, %v68_v55 }
   0xf   :  { %219 = vmatpush3.bf16.xpose.msra.mxu0 %v218_v15 }
  0x10   :  { %220 = vmatprep.subr.bf16.mxu0 %v241_v0 }
  0x17   :  { %222 = vmatpush3.bf16.xpose.msra.mxu0 %v221_v22 }
  0x18   :  { %223 = vmatprep.subr.bf16.mxu0 %v241_v0 }
  0x1f   :  { %225 = vmatpush3.bf16.xpose.msra.mxu0 %v224_v29 }
  0x20   :  { %226 = vmatprep.subr.bf16.mxu0 %v241_v0 }
  0x27   :  { %228 = vmatpush3.bf16.xpose.msra.mxu0 %v227_v36 }
  0x28   :  { %229 = vmatprep.subr.bf16.mxu0 %v241_v0 }
  0x2f   :  { %231 = vmatpush3.bf16.xpose.msra.mxu0 %v230_v43 }
  0x30   :  { %232 = vmatprep.subr.bf16.mxu0 %v241_v0 }
  0x37   :  { %234 = vmatpush3.bf16.xpose.msra.mxu0 %v233_v50 }
  0x38   :  { %235 = vmatprep.subr.bf16.mxu0 %v241_v0 }
  0x3f   :  { %237 = vmatpush3.bf16.xpose.msra.mxu0 %v236_v57 }
  0x46   :  { %212 = vmatmul.mubr.f32.vlgmr.msra.gmra.mrb[0].mxu0 %v71_v58 }
 0x119   :  { %v138_v60 = vpop.f32.mrb[0].mxu0 }
 0x11a   :  { %v155_v61 = vadd.f32 %v161_v59, %v138_v60  ;;  %v213_v62 = vpop.f32.mrb[1].mxu0 }
 0x11c   :  { %156 = vst [vmem:[%s386_s4] sm:$0xff] %v155_v61 }

</bundles_post_ra>
